<compile_context>
chip_gen: v7x
topology: tpu7x:2x2x1
jax: 0.10.0
libtpu: 0.0.40
codegen_flags: <defaults>
</compile_context>

<pallas_src>
import jax
import jax.numpy as jnp
from jax.experimental import pallas as pl
from jax.experimental.pallas import tpu as pltpu


def _pooler_kernel(wr_ref, hs_ref, wd_ref, bd_ref, out_ref):
    # wr_ref : SMEM (L,) f32     scalar_reweighting.weight (flattened)
    # hs_ref : VMEM (L, TB, H)   hidden-state tile, input dtype
    # wd_ref : VMEM (H, Np)      dense weight, pre-transposed (in, out), lane-padded
    # bd_ref : VMEM (1, Np) f32  dense bias with the reweighting bias folded in
    # out_ref: VMEM (TB, Np)
    num_l = hs_ref.shape[0]

    # L-weighted sum, accumulated into a few interleaved (TB, H) f32 partials
    # (no (L, TB, H) temporary; shorter serial add chain for large L).
    n_acc = 4 if num_l >= 16 else (2 if num_l >= 8 else 1)
    partials = []
    for a in range(n_acc):
        acc_a = hs_ref[a].astype(jnp.float32) * wr_ref[a]
        for l in range(a + n_acc, num_l, n_acc):
            acc_a = acc_a + hs_ref[l].astype(jnp.float32) * wr_ref[l]
        partials.append(acc_a)
    acc = partials[0]
    for p in partials[1:]:
        acc = acc + p

    # Dense layer on the MXU: (TB, H) @ (H, Np) -> (TB, Np).  Weight is already
    # in (in, out) layout so no in-kernel transpose per grid step.
    wd = wd_ref[...]
    lhs = acc if wd.dtype == jnp.float32 else acc.astype(wd.dtype)
    y = jnp.dot(lhs, wd, preferred_element_type=jnp.float32)
    y = y + bd_ref[...]
    out_ref[...] = jnp.tanh(y).astype(out_ref.dtype)


def _round_up(x, m):
    return (x + m - 1) // m * m


def _tpu_vmem_capacity():
    try:
        return int(pltpu.get_tpu_info().vmem_capacity_bytes)
    except Exception:
        return 64 * 1024 * 1024  # conservative: v7x per-TensorCore VMEM


def _choose_batch_tile(L, B, H, itemsize, hs_budget, tb_cap, want_multi_step):
    """Batch tile sized so the double-buffered hs blocks stay under hs_budget."""
    tb = hs_budget // max(1, 2 * L * H * itemsize)
    tb = int(min(tb_cap, tb))
    tb = (tb // 8) * 8
    if want_multi_step and B >= 16:
        # Keep >=2 (ideally >=4) grid steps so both v7x TensorCores get work and
        # the double-buffered DMA/compute overlap actually kicks in.
        tb = min(tb, max(8, _round_up(pl.cdiv(B, 4), 8)))
    if tb < 8:
        return B if B < 8 else 8
    return B if B <= tb else tb


def _pooler_call(hidden_states, wr, w_dense_t, bd_eff, *, single_buffer_resident):
    L, B, H = hidden_states.shape
    Np = w_dense_t.shape[1]

    vmem_cap = _tpu_vmem_capacity()
    if vmem_cap >= 100 * 1024 * 1024:
        # v5e / v6e: 128 MiB physical VMEM -> larger streaming tiles.
        hs_budget, tb_cap, vmem_limit, is_v7x = 48 << 20, 1024, 96 << 20, False
    else:
        # v7x: 64 MiB per TensorCore -> conservative tiles, ensure grid >= 2.
        hs_budget, tb_cap, vmem_limit, is_v7x = 16 << 20, 256, 48 << 20, True

    tb = _choose_batch_tile(L, B, H, hidden_states.dtype.itemsize,
                            hs_budget, tb_cap, want_multi_step=is_v7x)
    grid = (pl.cdiv(B, tb),)

    if single_buffer_resident:
        wd_spec = pl.BlockSpec((H, Np), lambda i: (0, 0), pipeline_mode=pl.Buffered(1))
        bd_spec = pl.BlockSpec((1, Np), lambda i: (0, 0), pipeline_mode=pl.Buffered(1))
    else:
        wd_spec = pl.BlockSpec((H, Np), lambda i: (0, 0))
        bd_spec = pl.BlockSpec((1, Np), lambda i: (0, 0))

    flops = 2 * B * H * Np + 2 * L * B * H
    bytes_accessed = (hidden_states.size * hidden_states.dtype.itemsize
                      + w_dense_t.size * w_dense_t.dtype.itemsize
                      + B * Np * hidden_states.dtype.itemsize)

    return pl.pallas_call(
        _pooler_kernel,
        out_shape=jax.ShapeDtypeStruct((B, Np), hidden_states.dtype),
        grid=grid,
        in_specs=[
            pl.BlockSpec(memory_space=pltpu.MemorySpace.SMEM),   # wr: SMEM scalars
            pl.BlockSpec((L, tb, H), lambda i: (0, i, 0)),       # hs: streamed over batch
            wd_spec,                                             # dense weight, resident
            bd_spec,                                             # folded bias, resident
        ],
        out_specs=pl.BlockSpec((tb, Np), lambda i: (i, 0)),
        compiler_params=pltpu.CompilerParams(
            dimension_semantics=("parallel",),
            vmem_limit_bytes=vmem_limit,
        ),
        cost_estimate=pl.CostEstimate(
            flops=flops, transcendentals=B * Np, bytes_accessed=bytes_accessed),
    )(wr, hidden_states, w_dense_t, bd_eff)


def prot_lstm_pooler(hidden_states, w_reweight, b_reweight, w_dense, b_dense):
    """hidden_states: (L, B, H) with L = 2*num_layers; w_reweight: (1, L);
    b_reweight: (1,); w_dense: (H, H) in PyTorch (out, in) layout; b_dense: (H,)."""
    L, B, H = hidden_states.shape

    wr = w_reweight.reshape(L).astype(jnp.float32)

    # Fold the reweighting bias into the dense bias (done in the ORIGINAL
    # (out, in) layout, before transposing):
    #   (p + b_rw) @ W^T + b_d = p @ W^T + (b_d + b_rw * W.sum(axis=1))
    w32 = w_dense.astype(jnp.float32)
    bd_eff = (b_dense.astype(jnp.float32)
              + b_reweight.astype(jnp.float32)[0] * jnp.sum(w32, axis=1))

    # Pre-transpose to (in, out) so the kernel does a plain MXU contraction.
    w_t = jnp.transpose(w32, (1, 0))

    # Lane-pad the OUTPUT dim to a multiple of 128: unmasked output stores and
    # full MXU columns. Padded bias/weight columns are zero -> tanh(0)=0 rows
    # sliced off below. (hs / the K dim are left unpadded to avoid extra HBM
    # traffic on the streamed input.)
    Np = _round_up(H, 128)
    if Np != H:
        w_t = jnp.pad(w_t, ((0, 0), (0, Np - H)))
        bd_eff = jnp.pad(bd_eff, (0, Np - H))
    bd_eff = bd_eff.reshape(1, Np)

    # bf16 activations -> bf16 weight (full-rate MXU, half the resident VMEM).
    # NOTE: the f32 weighted sum is then downcast to bf16 before the matmul.
    if hidden_states.dtype == jnp.bfloat16:
        w_t = w_t.astype(jnp.bfloat16)

    try:
        out = _pooler_call(hidden_states, wr, w_t, bd_eff,
                           single_buffer_resident=True)
    except Exception:
        # Fallback for jax/Mosaic versions without per-spec pipeline_mode.
        out = _pooler_call(hidden_states, wr, w_t, bd_eff,
                           single_buffer_resident=False)

    return out[:, :H] if Np != H else out


def reference(hidden_states, w_reweight, b_reweight, w_dense, b_dense):
    # Pure-JAX reference mirroring the PyTorch forward exactly.
    x = jnp.transpose(hidden_states, (1, 2, 0))                  # (B, H, L)
    pooled = jnp.einsum('bhl,ol->bho', x, w_reweight)[..., 0]    # (B, H)
    pooled = pooled + b_reweight[0]
    return jnp.tanh(pooled @ w_dense.T + b_dense)


if __name__ == "__main__":
    # config: num_layers=4 -> L = 2*num_layers = 8, hidden_dim=32, batch=2
    num_layers, hidden_dim, batch = 4, 32, 2
    L = 2 * num_layers

    key = jax.random.PRNGKey(0)
    k_hs, k_wr, k_br, k_wd, k_bd = jax.random.split(key, 5)

    hidden_states = jax.random.normal(k_hs, (L, batch, hidden_dim), dtype=jnp.float32)

    # PyTorch Linear shapes: weight (out, in), bias (out,)
    w_reweight = jax.random.normal(k_wr, (1, L), dtype=jnp.float32) * (1.0 / L) ** 0.5
    b_reweight = jax.random.normal(k_br, (1,), dtype=jnp.float32) * 0.1
    w_dense = jax.random.normal(k_wd, (hidden_dim, hidden_dim), dtype=jnp.float32) * (1.0 / hidden_dim) ** 0.5
    b_dense = jax.random.normal(k_bd, (hidden_dim,), dtype=jnp.float32) * 0.1

    out = prot_lstm_pooler(hidden_states, w_reweight, b_reweight, w_dense, b_dense)
    out = jax.block_until_ready(out)

    ref = reference(hidden_states, w_reweight, b_reweight, w_dense, b_dense)
    assert out.shape == (batch, hidden_dim)
    assert jnp.allclose(out, ref, atol=1e-4, rtol=1e-4), "mismatch vs reference"

    print("KERNEL_OK")
</pallas_src>

<mosaic_0001>
module attributes {stable_mosaic.version = 11 : i64} {
  func.func @_pooler_kernel(%arg0: i32, %arg1: memref<8xf32, #tpu.memory_space<smem>>, %arg2: memref<8x2x32xf32, #tpu.memory_space<vmem>>, %arg3: memref<32x128xf32, #tpu.memory_space<vmem>>, %arg4: memref<1x128xf32, #tpu.memory_space<vmem>>, %arg5: memref<2x128xf32, #tpu.memory_space<vmem>>) attributes {dimension_semantics = [#tpu.dimension_semantics<parallel>], iteration_bounds = array<i64: 1>, scalar_prefetch = 0 : i64, scratch_operands = 0 : i64, tpu.core_type = #tpu.core_type<tc>, window_params = [{transform_indices = @transform_0, window_bounds = array<i64: 8>}, {transform_indices = @transform_1, window_bounds = array<i64: 8, 2, 32>}, {pipeline_mode = #tpu.pipeline_mode<synchronous>, transform_indices = @transform_2, window_bounds = array<i64: 32, 128>}, {pipeline_mode = #tpu.pipeline_mode<synchronous>, transform_indices = @transform_3, window_bounds = array<i64: 1, 128>}, {transform_indices = @transform_4, window_bounds = array<i64: 2, 128>}]} {
    %c0 = arith.constant 0 : index
    %c0_0 = arith.constant 0 : index
    %c0_1 = arith.constant 0 : index
    %0 = vector.load %arg2[%c0, %c0_0, %c0_1] : memref<8x2x32xf32, #tpu.memory_space<vmem>>, vector<1x2x32xf32>
    %1 = vector.shape_cast %0 : vector<1x2x32xf32> to vector<2x32xf32>
    %c0_2 = arith.constant 0 : index
    %2 = memref.load %arg1[%c0_2] : memref<8xf32, #tpu.memory_space<smem>>
    %3 = vector.broadcast %2 : f32 to vector<2x32xf32>
    %4 = arith.mulf %1, %3 : vector<2x32xf32>
    %c2 = arith.constant 2 : index
    %c0_3 = arith.constant 0 : index
    %c0_4 = arith.constant 0 : index
    %5 = vector.load %arg2[%c2, %c0_3, %c0_4] : memref<8x2x32xf32, #tpu.memory_space<vmem>>, vector<1x2x32xf32>
    %6 = vector.shape_cast %5 : vector<1x2x32xf32> to vector<2x32xf32>
    %c2_5 = arith.constant 2 : index
    %7 = memref.load %arg1[%c2_5] : memref<8xf32, #tpu.memory_space<smem>>
    %8 = vector.broadcast %7 : f32 to vector<2x32xf32>
    %9 = arith.mulf %6, %8 : vector<2x32xf32>
    %10 = arith.addf %4, %9 : vector<2x32xf32>
    %c4 = arith.constant 4 : index
    %c0_6 = arith.constant 0 : index
    %c0_7 = arith.constant 0 : index
    %11 = vector.load %arg2[%c4, %c0_6, %c0_7] : memref<8x2x32xf32, #tpu.memory_space<vmem>>, vector<1x2x32xf32>
    %12 = vector.shape_cast %11 : vector<1x2x32xf32> to vector<2x32xf32>
    %c4_8 = arith.constant 4 : index
    %13 = memref.load %arg1[%c4_8] : memref<8xf32, #tpu.memory_space<smem>>
    %14 = vector.broadcast %13 : f32 to vector<2x32xf32>
    %15 = arith.mulf %12, %14 : vector<2x32xf32>
    %16 = arith.addf %10, %15 : vector<2x32xf32>
    %c6 = arith.constant 6 : index
    %c0_9 = arith.constant 0 : index
    %c0_10 = arith.constant 0 : index
    %17 = vector.load %arg2[%c6, %c0_9, %c0_10] : memref<8x2x32xf32, #tpu.memory_space<vmem>>, vector<1x2x32xf32>
    %18 = vector.shape_cast %17 : vector<1x2x32xf32> to vector<2x32xf32>
    %c6_11 = arith.constant 6 : index
    %19 = memref.load %arg1[%c6_11] : memref<8xf32, #tpu.memory_space<smem>>
    %20 = vector.broadcast %19 : f32 to vector<2x32xf32>
    %21 = arith.mulf %18, %20 : vector<2x32xf32>
    %22 = arith.addf %16, %21 : vector<2x32xf32>
    %c1 = arith.constant 1 : index
    %c0_12 = arith.constant 0 : index
    %c0_13 = arith.constant 0 : index
    %23 = vector.load %arg2[%c1, %c0_12, %c0_13] : memref<8x2x32xf32, #tpu.memory_space<vmem>>, vector<1x2x32xf32>
    %24 = vector.shape_cast %23 : vector<1x2x32xf32> to vector<2x32xf32>
    %c1_14 = arith.constant 1 : index
    %25 = memref.load %arg1[%c1_14] : memref<8xf32, #tpu.memory_space<smem>>
    %26 = vector.broadcast %25 : f32 to vector<2x32xf32>
    %27 = arith.mulf %24, %26 : vector<2x32xf32>
    %c3 = arith.constant 3 : index
    %c0_15 = arith.constant 0 : index
    %c0_16 = arith.constant 0 : index
    %28 = vector.load %arg2[%c3, %c0_15, %c0_16] : memref<8x2x32xf32, #tpu.memory_space<vmem>>, vector<1x2x32xf32>
    %29 = vector.shape_cast %28 : vector<1x2x32xf32> to vector<2x32xf32>
    %c3_17 = arith.constant 3 : index
    %30 = memref.load %arg1[%c3_17] : memref<8xf32, #tpu.memory_space<smem>>
    %31 = vector.broadcast %30 : f32 to vector<2x32xf32>
    %32 = arith.mulf %29, %31 : vector<2x32xf32>
    %33 = arith.addf %27, %32 : vector<2x32xf32>
    %c5 = arith.constant 5 : index
    %c0_18 = arith.constant 0 : index
    %c0_19 = arith.constant 0 : index
    %34 = vector.load %arg2[%c5, %c0_18, %c0_19] : memref<8x2x32xf32, #tpu.memory_space<vmem>>, vector<1x2x32xf32>
    %35 = vector.shape_cast %34 : vector<1x2x32xf32> to vector<2x32xf32>
    %c5_20 = arith.constant 5 : index
    %36 = memref.load %arg1[%c5_20] : memref<8xf32, #tpu.memory_space<smem>>
    %37 = vector.broadcast %36 : f32 to vector<2x32xf32>
    %38 = arith.mulf %35, %37 : vector<2x32xf32>
    %39 = arith.addf %33, %38 : vector<2x32xf32>
    %c7 = arith.constant 7 : index
    %c0_21 = arith.constant 0 : index
    %c0_22 = arith.constant 0 : index
    %40 = vector.load %arg2[%c7, %c0_21, %c0_22] : memref<8x2x32xf32, #tpu.memory_space<vmem>>, vector<1x2x32xf32>
    %41 = vector.shape_cast %40 : vector<1x2x32xf32> to vector<2x32xf32>
    %c7_23 = arith.constant 7 : index
    %42 = memref.load %arg1[%c7_23] : memref<8xf32, #tpu.memory_space<smem>>
    %43 = vector.broadcast %42 : f32 to vector<2x32xf32>
    %44 = arith.mulf %41, %43 : vector<2x32xf32>
    %45 = arith.addf %39, %44 : vector<2x32xf32>
    %46 = arith.addf %22, %45 : vector<2x32xf32>
    %c0_24 = arith.constant 0 : index
    %c0_25 = arith.constant 0 : index
    %47 = vector.load %arg3[%c0_24, %c0_25] : memref<32x128xf32, #tpu.memory_space<vmem>>, vector<32x128xf32>
    %cst = arith.constant dense<0.000000e+00> : vector<2x128xf32>
    %48 = tpu.matmul %46, %47, %cst {dimension_numbers = #tpu.dot_dimension_numbers<[1], [0], [0], [1], [0, 0, 1, 1], [], []>} : vector<2x32xf32>, vector<32x128xf32>, vector<2x128xf32> -> vector<2x128xf32>
    %c0_26 = arith.constant 0 : index
    %c0_27 = arith.constant 0 : index
    %49 = vector.load %arg4[%c0_26, %c0_27] : memref<1x128xf32, #tpu.memory_space<vmem>>, vector<1x128xf32>
    %50 = vector.broadcast %49 : vector<1x128xf32> to vector<2x128xf32>
    %51 = arith.addf %48, %50 : vector<2x128xf32>
    %52 = math.tanh %51 : vector<2x128xf32>
    %c0_28 = arith.constant 0 : index
    %c0_29 = arith.constant 0 : index
    %53 = vector.load %arg5[%c0_28, %c0_29] : memref<2x128xf32, #tpu.memory_space<vmem>>, vector<2x128xf32>
    tpu.vector_store %arg5[%c0_28, %c0_29], %52 {strides = array<i32>} : memref<2x128xf32, #tpu.memory_space<vmem>>, vector<2x128xf32>,
    return
  }
  func.func @transform_0(%arg0: i32) -> i32 {
    %c0_i32 = arith.constant 0 : i32
    %c0_i32_0 = arith.constant 0 : i32
    return %c0_i32 : i32
  }
  func.func @transform_1(%arg0: i32) -> (i32, i32, i32) {
    %c0_i32 = arith.constant 0 : i32
    %c0_i32_0 = arith.constant 0 : i32
    %c0_i32_1 = arith.constant 0 : i32
    return %c0_i32, %arg0, %c0_i32_0 : i32, i32, i32
  }
  func.func @transform_2(%arg0: i32) -> (i32, i32) {
    %c0_i32 = arith.constant 0 : i32
    %c0_i32_0 = arith.constant 0 : i32
    %c0_i32_1 = arith.constant 0 : i32
    return %c0_i32, %c0_i32_0 : i32, i32
  }
  func.func @transform_3(%arg0: i32) -> (i32, i32) {
    %c0_i32 = arith.constant 0 : i32
    %c0_i32_0 = arith.constant 0 : i32
    %c0_i32_1 = arith.constant 0 : i32
    return %c0_i32, %c0_i32_0 : i32, i32
  }
  func.func @transform_4(%arg0: i32) -> (i32, i32) {
    %c0_i32 = arith.constant 0 : i32
    %c0_i32_0 = arith.constant 0 : i32
    return %arg0, %c0_i32 : i32, i32
  }
}

module attributes {stable_mosaic.version = 11 : i64} {
  func.func @_pooler_kernel(%arg0: i32, %arg1: memref<8xf32, #tpu.memory_space<smem>>, %arg2: memref<8x2x32xf32, #tpu.memory_space<vmem>>, %arg3: memref<32x128xf32, #tpu.memory_space<vmem>>, %arg4: memref<1x128xf32, #tpu.memory_space<vmem>>, %arg5: memref<2x128xf32, #tpu.memory_space<vmem>>) attributes {dimension_semantics = [#tpu.dimension_semantics<parallel>], iteration_bounds = array<i64: 1>, scalar_prefetch = 0 : i64, scratch_operands = 0 : i64, tpu.core_type = #tpu.core_type<tc>, window_params = [{transform_indices = @transform_0, window_bounds = array<i64: 8>}, {transform_indices = @transform_1, window_bounds = array<i64: 8, 2, 32>}, {pipeline_mode = #tpu.pipeline_mode<synchronous>, transform_indices = @transform_2, window_bounds = array<i64: 32, 128>}, {pipeline_mode = #tpu.pipeline_mode<synchronous>, transform_indices = @transform_3, window_bounds = array<i64: 1, 128>}, {transform_indices = @transform_4, window_bounds = array<i64: 2, 128>}]} {
    %c0 = arith.constant 0 : index
    %c0_0 = arith.constant 0 : index
    %c0_1 = arith.constant 0 : index
    %0 = vector.load %arg2[%c0, %c0_0, %c0_1] : memref<8x2x32xf32, #tpu.memory_space<vmem>>, vector<1x2x32xf32>
    %1 = vector.shape_cast %0 : vector<1x2x32xf32> to vector<2x32xf32>
    %c0_2 = arith.constant 0 : index
    %2 = memref.load %arg1[%c0_2] : memref<8xf32, #tpu.memory_space<smem>>
    %3 = vector.broadcast %2 : f32 to vector<2x32xf32>
    %4 = arith.mulf %1, %3 : vector<2x32xf32>
    %c2 = arith.constant 2 : index
    %c0_3 = arith.constant 0 : index
    %c0_4 = arith.constant 0 : index
    %5 = vector.load %arg2[%c2, %c0_3, %c0_4] : memref<8x2x32xf32, #tpu.memory_space<vmem>>, vector<1x2x32xf32>
    %6 = vector.shape_cast %5 : vector<1x2x32xf32> to vector<2x32xf32>
    %c2_5 = arith.constant 2 : index
    %7 = memref.load %arg1[%c2_5] : memref<8xf32, #tpu.memory_space<smem>>
    %8 = vector.broadcast %7 : f32 to vector<2x32xf32>
    %9 = arith.mulf %6, %8 : vector<2x32xf32>
    %10 = arith.addf %4, %9 : vector<2x32xf32>
    %c4 = arith.constant 4 : index
    %c0_6 = arith.constant 0 : index
    %c0_7 = arith.constant 0 : index
    %11 = vector.load %arg2[%c4, %c0_6, %c0_7] : memref<8x2x32xf32, #tpu.memory_space<vmem>>, vector<1x2x32xf32>
    %12 = vector.shape_cast %11 : vector<1x2x32xf32> to vector<2x32xf32>
    %c4_8 = arith.constant 4 : index
    %13 = memref.load %arg1[%c4_8] : memref<8xf32, #tpu.memory_space<smem>>
    %14 = vector.broadcast %13 : f32 to vector<2x32xf32>
    %15 = arith.mulf %12, %14 : vector<2x32xf32>
    %16 = arith.addf %10, %15 : vector<2x32xf32>
    %c6 = arith.constant 6 : index
    %c0_9 = arith.constant 0 : index
    %c0_10 = arith.constant 0 : index
    %17 = vector.load %arg2[%c6, %c0_9, %c0_10] : memref<8x2x32xf32, #tpu.memory_space<vmem>>, vector<1x2x32xf32>
    %18 = vector.shape_cast %17 : vector<1x2x32xf32> to vector<2x32xf32>
    %c6_11 = arith.constant 6 : index
    %19 = memref.load %arg1[%c6_11] : memref<8xf32, #tpu.memory_space<smem>>
    %20 = vector.broadcast %19 : f32 to vector<2x32xf32>
    %21 = arith.mulf %18, %20 : vector<2x32xf32>
    %22 = arith.addf %16, %21 : vector<2x32xf32>
    %c1 = arith.constant 1 : index
    %c0_12 = arith.constant 0 : index
    %c0_13 = arith.constant 0 : index
    %23 = vector.load %arg2[%c1, %c0_12, %c0_13] : memref<8x2x32xf32, #tpu.memory_space<vmem>>, vector<1x2x32xf32>
    %24 = vector.shape_cast %23 : vector<1x2x32xf32> to vector<2x32xf32>
    %c1_14 = arith.constant 1 : index
    %25 = memref.load %arg1[%c1_14] : memref<8xf32, #tpu.memory_space<smem>>
    %26 = vector.broadcast %25 : f32 to vector<2x32xf32>
    %27 = arith.mulf %24, %26 : vector<2x32xf32>
    %c3 = arith.constant 3 : index
    %c0_15 = arith.constant 0 : index
    %c0_16 = arith.constant 0 : index
    %28 = vector.load %arg2[%c3, %c0_15, %c0_16] : memref<8x2x32xf32, #tpu.memory_space<vmem>>, vector<1x2x32xf32>
    %29 = vector.shape_cast %28 : vector<1x2x32xf32> to vector<2x32xf32>
    %c3_17 = arith.constant 3 : index
    %30 = memref.load %arg1[%c3_17] : memref<8xf32, #tpu.memory_space<smem>>
    %31 = vector.broadcast %30 : f32 to vector<2x32xf32>
    %32 = arith.mulf %29, %31 : vector<2x32xf32>
    %33 = arith.addf %27, %32 : vector<2x32xf32>
    %c5 = arith.constant 5 : index
    %c0_18 = arith.constant 0 : index
    %c0_19 = arith.constant 0 : index
    %34 = vector.load %arg2[%c5, %c0_18, %c0_19] : memref<8x2x32xf32, #tpu.memory_space<vmem>>, vector<1x2x32xf32>
    %35 = vector.shape_cast %34 : vector<1x2x32xf32> to vector<2x32xf32>
    %c5_20 = arith.constant 5 : index
    %36 = memref.load %arg1[%c5_20] : memref<8xf32, #tpu.memory_space<smem>>
    %37 = vector.broadcast %36 : f32 to vector<2x32xf32>
    %38 = arith.mulf %35, %37 : vector<2x32xf32>
    %39 = arith.addf %33, %38 : vector<2x32xf32>
    %c7 = arith.constant 7 : index
    %c0_21 = arith.constant 0 : index
    %c0_22 = arith.constant 0 : index
    %40 = vector.load %arg2[%c7, %c0_21, %c0_22] : memref<8x2x32xf32, #tpu.memory_space<vmem>>, vector<1x2x32xf32>
    %41 = vector.shape_cast %40 : vector<1x2x32xf32> to vector<2x32xf32>
    %c7_23 = arith.constant 7 : index
    %42 = memref.load %arg1[%c7_23] : memref<8xf32, #tpu.memory_space<smem>>
    %43 = vector.broadcast %42 : f32 to vector<2x32xf32>
    %44 = arith.mulf %41, %43 : vector<2x32xf32>
    %45 = arith.addf %39, %44 : vector<2x32xf32>
    %46 = arith.addf %22, %45 : vector<2x32xf32>
    %c0_24 = arith.constant 0 : index
    %c0_25 = arith.constant 0 : index
    %47 = vector.load %arg3[%c0_24, %c0_25] : memref<32x128xf32, #tpu.memory_space<vmem>>, vector<32x128xf32>
    %cst = arith.constant dense<0.000000e+00> : vector<2x128xf32>
    %48 = tpu.matmul %46, %47, %cst {dimension_numbers = #tpu.dot_dimension_numbers<[1], [0], [0], [1], [0, 0, 1, 1], [], []>} : vector<2x32xf32>, vector<32x128xf32>, vector<2x128xf32> -> vector<2x128xf32>
    %c0_26 = arith.constant 0 : index
    %c0_27 = arith.constant 0 : index
    %49 = vector.load %arg4[%c0_26, %c0_27] : memref<1x128xf32, #tpu.memory_space<vmem>>, vector<1x128xf32>
    %50 = vector.broadcast %49 : vector<1x128xf32> to vector<2x128xf32>
    %51 = arith.addf %48, %50 : vector<2x128xf32>
    %52 = math.tanh %51 : vector<2x128xf32>
    %c0_28 = arith.constant 0 : index
    %c0_29 = arith.constant 0 : index
    %53 = vector.load %arg5[%c0_28, %c0_29] : memref<2x128xf32, #tpu.memory_space<vmem>>, vector<2x128xf32>
    tpu.vector_store %arg5[%c0_28, %c0_29], %52 {strides = array<i32>} : memref<2x128xf32, #tpu.memory_space<vmem>>, vector<2x128xf32>,
    return
  }
  func.func @transform_0(%arg0: i32) -> i32 {
    %c0_i32 = arith.constant 0 : i32
    %c0_i32_0 = arith.constant 0 : i32
    return %c0_i32 : i32
  }
  func.func @transform_1(%arg0: i32) -> (i32, i32, i32) {
    %c0_i32 = arith.constant 0 : i32
    %c0_i32_0 = arith.constant 0 : i32
    %c0_i32_1 = arith.constant 0 : i32
    return %c0_i32, %arg0, %c0_i32_0 : i32, i32, i32
  }
  func.func @transform_2(%arg0: i32) -> (i32, i32) {
    %c0_i32 = arith.constant 0 : i32
    %c0_i32_0 = arith.constant 0 : i32
    %c0_i32_1 = arith.constant 0 : i32
    return %c0_i32, %c0_i32_0 : i32, i32
  }
  func.func @transform_3(%arg0: i32) -> (i32, i32) {
    %c0_i32 = arith.constant 0 : i32
    %c0_i32_0 = arith.constant 0 : i32
    %c0_i32_1 = arith.constant 0 : i32
    return %c0_i32, %c0_i32_0 : i32, i32
  }
  func.func @transform_4(%arg0: i32) -> (i32, i32) {
    %c0_i32 = arith.constant 0 : i32
    %c0_i32_0 = arith.constant 0 : i32
    return %arg0, %c0_i32 : i32, i32
  }
}

</mosaic_0001>

<bundles_post_ra>
// kernel: tpu_custom_call.1
= control target key start
LH: loop header
LB: loop body
LE: loop exit
PB: predicated region body
PF: predicated region fallthrough
CT: control target
= control target key end

     0   :  { %9 = vsyncpa [#allocation5], 0  ;;  %s422_s0 = inlined_call_operand.hbm [shape: f32[8], index: 0, kind: input, shape index: {}]   ;;  %s423_s1 = inlined_call_operand.hbm [shape: f32[8,2,32], index: 1, kind: input, shape index: {}]   ;;  %s424_s2 = inlined_call_operand.hbm [shape: f32[32,128], index: 2, kind: input, shape index: {}]   ;;  %s425_s3 = inlined_call_operand.vmem [shape: f32[1,128], index: 3, kind: input, shape index: {}]   ;;  %s426_s4 = inlined_call_operand.hbm [shape: f32[2,128], index: 4, kind: output, shape index: {}]  }
   0x1   :  { %10 = vsyncpa [#allocation3], 0 }
   0x2   :  { %11 = vsyncpa [#allocation8], 0 }
   0x3   :  { %12 = vsyncpa [#allocation4], 0  ;;  %s251_s17 = scalar_lea.hbm %s422_s0, 16 }
   0x4   :  { %p252_p0 = scmp.ne.s32.totalorder %s422_s0, %s251_s17  ;;  %p255_p1 = scmp.lt.u32.totalorder %s251_s17, %s422_s0 }
   0x6   :  { %p257_p2 = pnand %p255_p1, %p252_p0 }
   0x8   :  { %260 = shalt.err (!%p257_p2)
}
   0x9   :  { %s335_s22 = smov [#allocation2]   ;;  %s336_s25 = smov [#allocation6]  }
   0xa   :  { %20 = dma.hbm_to_smem %s422_s0, 16, %s335_s22, [#allocation5]  }
   0xb   :  { %s26_s26 = sshll.u32 %s336_s25, 4  ;;  %s261_s29 = scalar_lea.hbm %s423_s1, 256  ;;  %s27_s26 = int_to_ptr.vmem [resolvable:$true] %s26_s26 }
   0xc   :  { %p262_p3 = scmp.ne.s32.totalorder %s423_s1, %s261_s29  ;;  %p265_p4 = scmp.lt.u32.totalorder %s261_s29, %s423_s1 }
   0xe   :  { %p267_p5 = pnand %p265_p4, %p262_p3 }
  0x10   :  { %270 = shalt.err (!%p267_p5)
}
  0x11   :  { %s271_s8 = scalar_lea.vmem %s27_s26, 256  ;;  %p276_p7 = scmp.lt.s32.totalorder %s27_s26, %s27_s26 }
  0x12   :  { %p272_p6 = scmp.ne.s32.totalorder %s27_s26, %s271_s8  ;;  %p277_p8 = scmp.lt.s32.totalorder %s271_s8, %s271_s8 }
  0x14   :  { %p278_p9 = por %p277_p8, %p276_p7 }
  0x16   :  { %p279_p10 = pnand %p278_p9, %p272_p6 }
  0x18   :  { %282 = shalt.err (!%p279_p10)
}
  0x19   :  { %s337_s0 = smov 32   ;;  %s338_s9 = smov 2  }
  0x1a   :  { %32 = dma.hbm_to_vmem [thread:$0]  %s423_s1, 256, %s27_s26, [#allocation3], %s337_s0, %s337_s0, %s338_s9  }
  0x1b   :  { %s339_s12 = smov [#allocation7]   ;;  %s283_s16 = scalar_lea.hbm %s424_s2, 512 }
  0x1c   :  { %s38_s13 = sshll.u32 %s339_s12, 4  ;;  %p284_p11 = scmp.ne.s32.totalorder %s424_s2, %s283_s16  ;;  %s39_s13 = int_to_ptr.vmem [resolvable:$true] %s38_s13 }
  0x1d   :  { %p287_p12 = scmp.lt.u32.totalorder %s283_s16, %s424_s2 }
  0x1f   :  { %p289_p13 = pnand %p287_p12, %p284_p11 }
  0x21   :  { %292 = shalt.err (!%p289_p13)
}
  0x22   :  { %s293_s21 = scalar_lea.vmem %s39_s13, 512  ;;  %p298_p1 = scmp.lt.s32.totalorder %s39_s13, %s39_s13 }
  0x23   :  { %p294_p0 = scmp.ne.s32.totalorder %s39_s13, %s293_s21  ;;  %p299_p2 = scmp.lt.s32.totalorder %s293_s21, %s293_s21 }
  0x25   :  { %p300_p3 = por %p299_p2, %p298_p1 }
  0x27   :  { %p301_p4 = pnand %p300_p3, %p294_p0 }
  0x29   :  { %304 = shalt.err (!%p301_p4)
}
  0x2a   :  { %s340_s1 = smov 128   ;;  %s341_s22 = smov 8  }
  0x2b   :  { %44 = dma.hbm_to_vmem [thread:$0]  %s424_s2, 512, %s39_s13, [#allocation8], %s340_s1, %s340_s1, %s341_s22  }
  0x2c   :  { %327 = dma.done.wait [#allocation5], 16  }
  0x2d   :  { %328 = vsyncadd [#allocation5], 4294967280 }
  0x2e   :  { %329 = dma.done.wait [#allocation3], 256  }
  0x2f   :  { %330 = vsyncadd [#allocation3], 4294967040 }
  0x30   :  { %331 = dma.done.wait [#allocation8], 512  }
  0x31   :  { %332 = vsyncadd [#allocation8], 4294966784 }
  0x32   :  { %56 = sfence }
  0x33   :  { %v103_v0 = vld [vmem:[#allocation7] sm:$0xff]  ;;  %v104_v1 = vld [vmem:[#allocation7 + $0x8] sm:$0xff]  ;;  %v105_v2 = vld [vmem:[#allocation7 + $0x10] sm:$0xff]  ;;  %v342_v3 = vmov 0.0|0.0   ;;  %vm343_vm0 = vmmov 0   ;;  %v344_v6 = vmov 0.0  }
  0x34   :  { %232 = vmatprep.subr.bf16.mxu0 %v342_v3  ;;  %v233_v4 = vpack.c.bf16 %v104_v1, %v103_v0  ;;  %v106_v5 = vld [vmem:[#allocation7 + $0x18] sm:$0xff]  ;;  %229 = vmatprep.mubr.msk.f32.mxu0 %vm343_vm0, %v344_v6  ;;  %s58_s25 = sld [smem:[#allocation2]]  ;;  %s207_s26 = sld [smem:[#allocation2 + $0x2]]  ;;  %v57_v8 = vld [vmem:[#allocation6] sm:$0x3]  ;;  %vm114_vm1 = vcmask 261120  }
  0x35   :  { %v236_v7 = vpack.c.bf16 %v106_v5, %v105_v2  ;;  %s208_s2 = sld [smem:[#allocation2 + $0x4]]  ;;  %s209_s27 = sld [smem:[#allocation2 + $0x6]]  ;;  %v62_v9 = vld [vmem:[#allocation6 + $0x4] sm:$0x3]  ;;  %v68_v11 = vld [vmem:[#allocation6 + $0x8] sm:$0x3] }
  0x36   :  { %234 = vmatpush3.bf16.msra.mxu0 %v233_v4  ;;  %s210_s28 = sld [smem:[#allocation2 + $0x1]]  ;;  %s211_s29 = sld [smem:[#allocation2 + $0x3]]  ;;  %v80_v14 = vld [vmem:[#allocation6 + $0x2] sm:$0x3]  ;;  %v74_v17 = vld [vmem:[#allocation6 + $0xc] sm:$0x3] }
  0x37   :  { %235 = vmatprep.subr.bf16.mxu0 %v342_v3  ;;  %s212_s30 = sld [smem:[#allocation2 + $0x5]]  ;;  %s213_s5 = sld [smem:[#allocation2 + $0x7]]  ;;  %v85_v19 = vld [vmem:[#allocation6 + $0x6] sm:$0x3]  ;;  %v91_v20 = vld [vmem:[#allocation6 + $0xa] sm:$0x3] }
  0x38   :  { %v97_v27 = vld [vmem:[#allocation6 + $0xe] sm:$0x3]  ;;  %v214_v39 = vld [vmem:[%s425_s3] ss:$0 sm:$0xff]  ;;  %s345_s8 = smov [#allocation9]  }
  0x39   :  { %s196_s0 = sshll.u32 %s345_s8, 4  ;;  %s197_s0 = int_to_ptr.vmem [resolvable:$true] %s196_s0 }
  0x3a   :  { %237 = vmatpush3.bf16.msra.mxu0 %v236_v7  ;;  %v59_v10 = vstv %s58_s25  ;;  %v64_v13 = vstv %s207_s26  ;;  %s305_s9 = scalar_lea.vmem %s197_s0, 32  ;;  %p310_p6 = scmp.lt.s32.totalorder %s197_s0, %s197_s0 }
  0x3b   :  { %v60_v12 = vmul.f32 %v59_v10, %v57_v8  ;;  %v65_v15 = vmul.f32 %v64_v13, %v62_v9  ;;  %v70_v16 = vstv %s208_s2  ;;  %v76_v18 = vstv %s209_s27  ;;  %p306_p5 = scmp.ne.s32.totalorder %s197_s0, %s305_s9  ;;  %p311_p7 = scmp.lt.s32.totalorder %s305_s9, %s305_s9 }
  0x3c   :  { %v71_v21 = vmul.f32 %v70_v16, %v68_v11  ;;  %v82_v22 = vstv %s210_s28  ;;  %v87_v25 = vstv %s211_s29  ;;  %v77_v28 = vmul.f32 %v76_v18, %v74_v17 }
  0x3d   :  { %v66_v23 = vadd.f32 %v65_v15, %v60_v12  ;;  %v83_v24 = vmul.f32 %v82_v22, %v80_v14  ;;  %v93_v26 = vstv %s212_s30  ;;  %v88_v29 = vmul.f32 %v87_v25, %v85_v19  ;;  %p312_p8 = por %p311_p7, %p310_p6 }
  0x3e   :  { %v94_v30 = vmul.f32 %v93_v26, %v91_v20  ;;  %v99_v31 = vstv %s213_s5 }
  0x3f   :  { %v72_v32 = vadd.f32 %v71_v21, %v66_v23  ;;  %v89_v33 = vadd.f32 %v88_v29, %v83_v24  ;;  %v100_v34 = vmul.f32 %v99_v31, %v97_v27  ;;  %p313_p9 = pnand %p312_p8, %p306_p5 }
  0x41   :  { %v78_v35 = vadd.f32 %v77_v28, %v72_v32  ;;  %v95_v36 = vadd.f32 %v94_v30, %v89_v33 }
  0x43   :  { %v101_v37 = vadd.f32 %v100_v34, %v95_v36 }
  0x45   :  { %v102_v38 = vadd.f32 %v101_v37, %v78_v35 }
  0x47   :  { %230 = vmatmul.mubr.msk.f32.vlgmr.msra.gmra.mrb[0].mxu0 %vm114_vm1, %v102_v38 }
 0x11a   :  { %v184_v40 = vpop.f32.mrb[0].mxu0 }
 0x11b   :  { %v185_v41 = vadd.f32 %v214_v39, %v184_v40  ;;  %v231_v42 = vpop.f32.mrb[1].mxu0 }
 0x11d   :  { %249 = vtanh.f32 %v185_v41 }
 0x127   :  { %v250_v43 = vpop.eup %249 }
 0x128   :  { %189 = vst [vmem:[#allocation9] sm:$0x3] %v250_v43 }
 0x129   :  { %316 = shalt.err (!%p313_p9)
}
 0x12a   :  { %s317_s3 = scalar_lea.hbm %s426_s4, 32 }
 0x12b   :  { %p318_p10 = scmp.ne.s32.totalorder %s426_s4, %s317_s3  ;;  %p321_p11 = scmp.lt.u32.totalorder %s317_s3, %s426_s4 }
 0x12d   :  { %p323_p12 = pnand %p321_p11, %p318_p10 }
 0x12f   :  { %326 = shalt.err (!%p323_p12)
}
 0x130   :  { %199 = dma.vmem_to_hbm [thread:$0]  %s197_s0, 32, %s426_s4, [#allocation4]  }
 0x131   :  { %333 = dma.done.wait [#allocation4], 32  }
 0x132   :  { %334 = vsyncadd [#allocation4], 4294967264 }
 0x133   :  { %203 = vsyncpa [#allocation3], 1 }
 0x134   :  { %204 = vsyncpa [#allocation8], 1 }
 0x135   :  { %205 = vsyncpa [#allocation4], 1 }
 0x136   :  { %206 = vsyncpa [#allocation5], 1 }

// kernel: tpu_custom_call.1
= control target key start
LH: loop header
LB: loop body
LE: loop exit
PB: predicated region body
PF: predicated region fallthrough
CT: control target
= control target key end

     0   :  { %9 = vsyncpa [#allocation5], 0  ;;  %s422_s0 = inlined_call_operand.hbm [shape: f32[8], index: 0, kind: input, shape index: {}]   ;;  %s423_s1 = inlined_call_operand.hbm [shape: f32[8,2,32], index: 1, kind: input, shape index: {}]   ;;  %s424_s2 = inlined_call_operand.hbm [shape: f32[32,128], index: 2, kind: input, shape index: {}]   ;;  %s425_s3 = inlined_call_operand.vmem [shape: f32[1,128], index: 3, kind: input, shape index: {}]   ;;  %s426_s4 = inlined_call_operand.hbm [shape: f32[2,128], index: 4, kind: output, shape index: {}]  }
   0x1   :  { %10 = vsyncpa [#allocation3], 0 }
   0x2   :  { %11 = vsyncpa [#allocation8], 0 }
   0x3   :  { %12 = vsyncpa [#allocation4], 0  ;;  %s251_s17 = scalar_lea.hbm %s422_s0, 16 }
   0x4   :  { %p252_p0 = scmp.ne.s32.totalorder %s422_s0, %s251_s17  ;;  %p255_p1 = scmp.lt.u32.totalorder %s251_s17, %s422_s0 }
   0x6   :  { %p257_p2 = pnand %p255_p1, %p252_p0 }
   0x8   :  { %260 = shalt.err (!%p257_p2)
}
   0x9   :  { %s335_s22 = smov [#allocation2]   ;;  %s336_s25 = smov [#allocation6]  }
   0xa   :  { %20 = dma.hbm_to_smem %s422_s0, 16, %s335_s22, [#allocation5]  }
   0xb   :  { %s26_s26 = sshll.u32 %s336_s25, 4  ;;  %s261_s29 = scalar_lea.hbm %s423_s1, 256  ;;  %s27_s26 = int_to_ptr.vmem [resolvable:$true] %s26_s26 }
   0xc   :  { %p262_p3 = scmp.ne.s32.totalorder %s423_s1, %s261_s29  ;;  %p265_p4 = scmp.lt.u32.totalorder %s261_s29, %s423_s1 }
   0xe   :  { %p267_p5 = pnand %p265_p4, %p262_p3 }
  0x10   :  { %270 = shalt.err (!%p267_p5)
}
  0x11   :  { %s271_s8 = scalar_lea.vmem %s27_s26, 256  ;;  %p276_p7 = scmp.lt.s32.totalorder %s27_s26, %s27_s26 }
  0x12   :  { %p272_p6 = scmp.ne.s32.totalorder %s27_s26, %s271_s8  ;;  %p277_p8 = scmp.lt.s32.totalorder %s271_s8, %s271_s8 }
  0x14   :  { %p278_p9 = por %p277_p8, %p276_p7 }
  0x16   :  { %p279_p10 = pnand %p278_p9, %p272_p6 }
  0x18   :  { %282 = shalt.err (!%p279_p10)
}
  0x19   :  { %s337_s0 = smov 32   ;;  %s338_s9 = smov 2  }
  0x1a   :  { %32 = dma.hbm_to_vmem [thread:$0]  %s423_s1, 256, %s27_s26, [#allocation3], %s337_s0, %s337_s0, %s338_s9  }
  0x1b   :  { %s339_s12 = smov [#allocation7]   ;;  %s283_s16 = scalar_lea.hbm %s424_s2, 512 }
  0x1c   :  { %s38_s13 = sshll.u32 %s339_s12, 4  ;;  %p284_p11 = scmp.ne.s32.totalorder %s424_s2, %s283_s16  ;;  %s39_s13 = int_to_ptr.vmem [resolvable:$true] %s38_s13 }
  0x1d   :  { %p287_p12 = scmp.lt.u32.totalorder %s283_s16, %s424_s2 }
  0x1f   :  { %p289_p13 = pnand %p287_p12, %p284_p11 }
  0x21   :  { %292 = shalt.err (!%p289_p13)
}
  0x22   :  { %s293_s21 = scalar_lea.vmem %s39_s13, 512  ;;  %p298_p1 = scmp.lt.s32.totalorder %s39_s13, %s39_s13 }
  0x23   :  { %p294_p0 = scmp.ne.s32.totalorder %s39_s13, %s293_s21  ;;  %p299_p2 = scmp.lt.s32.totalorder %s293_s21, %s293_s21 }
  0x25   :  { %p300_p3 = por %p299_p2, %p298_p1 }
  0x27   :  { %p301_p4 = pnand %p300_p3, %p294_p0 }
  0x29   :  { %304 = shalt.err (!%p301_p4)
}
  0x2a   :  { %s340_s1 = smov 128   ;;  %s341_s22 = smov 8  }
  0x2b   :  { %44 = dma.hbm_to_vmem [thread:$0]  %s424_s2, 512, %s39_s13, [#allocation8], %s340_s1, %s340_s1, %s341_s22  }
  0x2c   :  { %327 = dma.done.wait [#allocation5], 16  }
  0x2d   :  { %328 = vsyncadd [#allocation5], 4294967280 }
  0x2e   :  { %329 = dma.done.wait [#allocation3], 256  }
  0x2f   :  { %330 = vsyncadd [#allocation3], 4294967040 }
  0x30   :  { %331 = dma.done.wait [#allocation8], 512  }
  0x31   :  { %332 = vsyncadd [#allocation8], 4294966784 }
  0x32   :  { %56 = sfence }
  0x33   :  { %v103_v0 = vld [vmem:[#allocation7] sm:$0xff]  ;;  %v104_v1 = vld [vmem:[#allocation7 + $0x8] sm:$0xff]  ;;  %v105_v2 = vld [vmem:[#allocation7 + $0x10] sm:$0xff]  ;;  %v342_v3 = vmov 0.0|0.0   ;;  %vm343_vm0 = vmmov 0   ;;  %v344_v6 = vmov 0.0  }
  0x34   :  { %232 = vmatprep.subr.bf16.mxu0 %v342_v3  ;;  %v233_v4 = vpack.c.bf16 %v104_v1, %v103_v0  ;;  %v106_v5 = vld [vmem:[#allocation7 + $0x18] sm:$0xff]  ;;  %229 = vmatprep.mubr.msk.f32.mxu0 %vm343_vm0, %v344_v6  ;;  %s58_s25 = sld [smem:[#allocation2]]  ;;  %s207_s26 = sld [smem:[#allocation2 + $0x2]]  ;;  %v57_v8 = vld [vmem:[#allocation6] sm:$0x3]  ;;  %vm114_vm1 = vcmask 261120  }
  0x35   :  { %v236_v7 = vpack.c.bf16 %v106_v5, %v105_v2  ;;  %s208_s2 = sld [smem:[#allocation2 + $0x4]]  ;;  %s209_s27 = sld [smem:[#allocation2 + $0x6]]  ;;  %v62_v9 = vld [vmem:[#allocation6 + $0x4] sm:$0x3]  ;;  %v68_v11 = vld [vmem:[#allocation6 + $0x8] sm:$0x3] }
  0x36   :  { %234 = vmatpush3.bf16.msra.mxu0 %v233_v4  ;;  %s210_s28 = sld [smem:[#allocation2 + $0x1]]  ;;  %s211_s29 = sld [smem:[#allocation2 + $0x3]]  ;;  %v80_v14 = vld [vmem:[#allocation6 + $0x2] sm:$0x3]  ;;  %v74_v17 = vld [vmem:[#allocation6 + $0xc] sm:$0x3] }
  0x37   :  { %235 = vmatprep.subr.bf16.mxu0 %v342_v3  ;;  %s212_s30 = sld [smem:[#allocation2 + $0x5]]  ;;  %s213_s5 = sld [smem:[#allocation2 + $0x7]]  ;;  %v85_v19 = vld [vmem:[#allocation6 + $0x6] sm:$0x3]  ;;  %v91_v20 = vld [vmem:[#allocation6 + $0xa] sm:$0x3] }
  0x38   :  { %v97_v27 = vld [vmem:[#allocation6 + $0xe] sm:$0x3]  ;;  %v214_v39 = vld [vmem:[%s425_s3] ss:$0 sm:$0xff]  ;;  %s345_s8 = smov [#allocation9]  }
  0x39   :  { %s196_s0 = sshll.u32 %s345_s8, 4  ;;  %s197_s0 = int_to_ptr.vmem [resolvable:$true] %s196_s0 }
  0x3a   :  { %237 = vmatpush3.bf16.msra.mxu0 %v236_v7  ;;  %v59_v10 = vstv %s58_s25  ;;  %v64_v13 = vstv %s207_s26  ;;  %s305_s9 = scalar_lea.vmem %s197_s0, 32  ;;  %p310_p6 = scmp.lt.s32.totalorder %s197_s0, %s197_s0 }
  0x3b   :  { %v60_v12 = vmul.f32 %v59_v10, %v57_v8  ;;  %v65_v15 = vmul.f32 %v64_v13, %v62_v9  ;;  %v70_v16 = vstv %s208_s2  ;;  %v76_v18 = vstv %s209_s27  ;;  %p306_p5 = scmp.ne.s32.totalorder %s197_s0, %s305_s9  ;;  %p311_p7 = scmp.lt.s32.totalorder %s305_s9, %s305_s9 }
  0x3c   :  { %v71_v21 = vmul.f32 %v70_v16, %v68_v11  ;;  %v82_v22 = vstv %s210_s28  ;;  %v87_v25 = vstv %s211_s29  ;;  %v77_v28 = vmul.f32 %v76_v18, %v74_v17 }
  0x3d   :  { %v66_v23 = vadd.f32 %v65_v15, %v60_v12  ;;  %v83_v24 = vmul.f32 %v82_v22, %v80_v14  ;;  %v93_v26 = vstv %s212_s30  ;;  %v88_v29 = vmul.f32 %v87_v25, %v85_v19  ;;  %p312_p8 = por %p311_p7, %p310_p6 }
  0x3e   :  { %v94_v30 = vmul.f32 %v93_v26, %v91_v20  ;;  %v99_v31 = vstv %s213_s5 }
  0x3f   :  { %v72_v32 = vadd.f32 %v71_v21, %v66_v23  ;;  %v89_v33 = vadd.f32 %v88_v29, %v83_v24  ;;  %v100_v34 = vmul.f32 %v99_v31, %v97_v27  ;;  %p313_p9 = pnand %p312_p8, %p306_p5 }
  0x41   :  { %v78_v35 = vadd.f32 %v77_v28, %v72_v32  ;;  %v95_v36 = vadd.f32 %v94_v30, %v89_v33 }
  0x43   :  { %v101_v37 = vadd.f32 %v100_v34, %v95_v36 }
  0x45   :  { %v102_v38 = vadd.f32 %v101_v37, %v78_v35 }
  0x47   :  { %230 = vmatmul.mubr.msk.f32.vlgmr.msra.gmra.mrb[0].mxu0 %vm114_vm1, %v102_v38 }
 0x11a   :  { %v184_v40 = vpop.f32.mrb[0].mxu0 }
 0x11b   :  { %v185_v41 = vadd.f32 %v214_v39, %v184_v40  ;;  %v231_v42 = vpop.f32.mrb[1].mxu0 }
 0x11d   :  { %249 = vtanh.f32 %v185_v41 }
 0x127   :  { %v250_v43 = vpop.eup %249 }
 0x128   :  { %189 = vst [vmem:[#allocation9] sm:$0x3] %v250_v43 }
 0x129   :  { %316 = shalt.err (!%p313_p9)
}
 0x12a   :  { %s317_s3 = scalar_lea.hbm %s426_s4, 32 }
 0x12b   :  { %p318_p10 = scmp.ne.s32.totalorder %s426_s4, %s317_s3  ;;  %p321_p11 = scmp.lt.u32.totalorder %s317_s3, %s426_s4 }
 0x12d   :  { %p323_p12 = pnand %p321_p11, %p318_p10 }
 0x12f   :  { %326 = shalt.err (!%p323_p12)
}
 0x130   :  { %199 = dma.vmem_to_hbm [thread:$0]  %s197_s0, 32, %s426_s4, [#allocation4]  }
 0x131   :  { %333 = dma.done.wait [#allocation4], 32  }
 0x132   :  { %334 = vsyncadd [#allocation4], 4294967264 }
 0x133   :  { %203 = vsyncpa [#allocation3], 1 }
 0x134   :  { %204 = vsyncpa [#allocation8], 1 }
 0x135   :  { %205 = vsyncpa [#allocation4], 1 }
 0x136   :  { %206 = vsyncpa [#allocation5], 1 }

</bundles_post_ra>
